<compile_context>
chip_gen: v7x
topology: tpu7x:2x2x1
jax: 0.10.0
libtpu: 0.0.40
codegen_flags: <defaults>
</compile_context>

<pallas_src>
import jax
import jax.numpy as jnp
from jax.experimental import pallas as pl
from jax.experimental.pallas import tpu as pltpu


def _log1p(t):
    # Accurate log(1 + t) for small t using only log/where (avoids depending on
    # a log1p lowering rule while keeping the few-ULP accuracy log1p provides).
    u = 1.0 + t
    d = u - 1.0
    return jnp.where(d == 0.0, t, jnp.log(u) * (t / d))


def classifier_kernel(x_ref, w1_ref, b1_ref, w23t_ref, b23_ref, o_ref):
    # x_ref:    [TB, F] f32   streamed batch tile (natural layout)
    # w1_ref:   [F, F]  bf16  fc[0] weight, stored [in, out]  (resident)
    # b1_ref:   [1, F]  f32   fc[0] bias                      (resident)
    # w23t_ref: [2, F]  f32   fused fc[2] + fcclass weight, transposed
    # b23_ref:  (2,)    f32   fused bias (SMEM scalars)
    # o_ref:    [TB, 2] f32
    x = x_ref[...]

    # fc[0]: Linear(F, F) + ReLU.  bf16 MXU operands, f32 accumulation.
    h = jnp.dot(x.astype(jnp.bfloat16), w1_ref[...],
                preferred_element_type=jnp.float32)
    h = jnp.maximum(h + b1_ref[...], 0.0)                      # [TB, F] f32

    # fc[2] (F -> F//2) and fcclass (F//2 -> 2) have no nonlinearity between
    # them, so they collapse to a single Linear(F, 2).  With only 2 output
    # columns, do it as broadcast-multiply + lane-axis reduction on the
    # VPU/XLU rather than streaming h through the MXU again.
    w23t = w23t_ref[...]                                       # [2, F] f32

    def _column(j):
        y = jnp.sum(h * w23t[j:j + 1, :], axis=1, keepdims=True) + b23_ref[j]
        # fcevd: Softplus (beta=1, threshold=20 -- torch defaults), stable form.
        sp = jnp.maximum(y, 0.0) + _log1p(jnp.exp(-jnp.abs(y)))
        return jnp.where(y > 20.0, y, sp)                      # [TB, 1]

    o_ref[:, 0:1] = _column(0)
    o_ref[:, 1:2] = _column(1)


def _pick_tb(B, F):
    """Batch-tile size: big enough to amortize per-grid-step overhead, small
    enough that double-buffered x tiles fit comfortably in scoped VMEM, and
    split >= 2 ways when B allows (engages both TensorCores on v7x)."""
    rup = lambda v, m: -(-v // m) * m
    # VMEM bytes of one streamed x block row: the lane (last) dim pads to 128.
    row_bytes = max(F, 128) * 4
    vmem_cap = max(128, (8 * 1024 * 1024 // (2 * row_bytes)) // 128 * 128)
    cap = min(8192, vmem_cap)
    if B <= 256:
        return rup(max(B, 1), 8)          # one small tile; padding negligible
    # split the batch ~2 ways (v7x dual core), but never exceed the VMEM cap
    return max(128, min(cap, rup(rup(B, 2) // 2, 128)))


def classifier_forward(x, params, *, tb=None):
    """x: [B, F] float32.  params: w1/b1/w2/b2/w3/b3 with weights stored [in, out]."""
    B, F = x.shape
    if tb is None:
        tb = _pick_tb(B, F)
    tb = max(8, (tb // 8) * 8)            # sublane multiple
    n_tiles = pl.cdiv(B, tb)
    B_pad = n_tiles * tb
    if B_pad != B:
        # Only for ragged batch sizes; typical (multiple-of-tile) batches are
        # streamed straight from HBM with no extra pass over x.
        x = jnp.pad(x.astype(jnp.float32), ((0, B_pad - B), (0, 0)))
    else:
        x = x.astype(jnp.float32)

    # One-time weight prep in the wrapper (tiny, resident in VMEM):
    w1_bf = params["w1"].astype(jnp.bfloat16)                            # [F, F]
    b1 = params["b1"].reshape(1, F).astype(jnp.float32)                  # [1, F]
    w23t = (params["w2"] @ params["w3"]).T.astype(jnp.float32)           # [2, F]
    b23 = (params["b2"] @ params["w3"] + params["b3"]).reshape(2).astype(jnp.float32)

    const = lambda i: (0, 0)
    out = pl.pallas_call(
        classifier_kernel,
        out_shape=jax.ShapeDtypeStruct((B_pad, 2), jnp.float32),
        grid=(n_tiles,),
        in_specs=[
            pl.BlockSpec((tb, F), lambda i: (i, 0)),                 # x tile (streamed)
            pl.BlockSpec((F, F), const),                             # w1  (resident, bf16)
            pl.BlockSpec((1, F), const),                             # b1  (resident)
            pl.BlockSpec((2, F), const),                             # w23t (resident)
            pl.BlockSpec(memory_space=pltpu.MemorySpace.SMEM),       # b23 scalars
        ],
        out_specs=pl.BlockSpec((tb, 2), lambda i: (i, 0)),
        compiler_params=pltpu.CompilerParams(
            dimension_semantics=("parallel",),
            vmem_limit_bytes=32 * 1024 * 1024,
        ),
    )(x, w1_bf, b1, w23t, b23)

    return out[:B] if B_pad != B else out


def init_params(key, feature_out):
    """Deterministic synthetic parameters (same shapes as the PyTorch module)."""
    f = feature_out
    h = feature_out // 2
    k1, k2, k3, k4, k5, k6 = jax.random.split(key, 6)

    def lin(kw, kb, fan_in, fan_out):
        bound = 1.0 / jnp.sqrt(fan_in)
        # stored as [in, out] (transposed relative to torch's [out, in])
        w = jax.random.uniform(kw, (fan_in, fan_out), jnp.float32, -bound, bound)
        b = jax.random.uniform(kb, (1, fan_out), jnp.float32, -bound, bound)
        return w, b

    w1, b1 = lin(k1, k2, f, f)
    w2, b2 = lin(k3, k4, f, h)
    w3, b3 = lin(k5, k6, h, 2)
    return {"w1": w1, "b1": b1, "w2": w2, "b2": b2, "w3": w3, "b3": b3}


def reference_forward(x, p):
    # Layer-by-layer f32 reference matching the PyTorch module exactly.
    h = jnp.maximum(x @ p["w1"] + p["b1"], 0.0)
    h = h @ p["w2"] + p["b2"]
    h = h @ p["w3"] + p["b3"]
    sp = jnp.maximum(h, 0.0) + jnp.log1p(jnp.exp(-jnp.abs(h)))
    return jnp.where(h > 20.0, h, sp)


if __name__ == "__main__":
    feature_out = 32
    batch = 8

    key = jax.random.PRNGKey(0)
    kx, kp = jax.random.split(key)
    x = jax.random.normal(kx, (batch, feature_out), jnp.float32)
    params = init_params(kp, feature_out)

    out = classifier_forward(x, params)
    out = jax.block_until_ready(out)

    ref = reference_forward(x, params)
    assert out.shape == (batch, 2)
    assert bool(jnp.all(jnp.isfinite(out)))
    # bf16 MXU operands in the first linear + fused W23 -> ~1e-2 level agreement
    # with the layer-by-layer f32 reference.
    assert jnp.allclose(out, ref, atol=5e-2, rtol=5e-2), float(jnp.max(jnp.abs(out - ref)))

    print("KERNEL_OK")
</pallas_src>

<mosaic_0001>
module attributes {stable_mosaic.version = 11 : i64} {
  func.func @classifier_kernel(%arg0: i32, %arg1: memref<8x32xf32, #tpu.memory_space<vmem>>, %arg2: memref<32x32xbf16, #tpu.memory_space<vmem>>, %arg3: memref<1x32xf32, #tpu.memory_space<vmem>>, %arg4: memref<2x32xf32, #tpu.memory_space<vmem>>, %arg5: memref<2xf32, #tpu.memory_space<smem>>, %arg6: memref<8x2xf32, #tpu.memory_space<vmem>>) attributes {dimension_semantics = [#tpu.dimension_semantics<parallel>], iteration_bounds = array<i64: 1>, scalar_prefetch = 0 : i64, scratch_operands = 0 : i64, tpu.core_type = #tpu.core_type<tc>, window_params = [{transform_indices = @transform_0, window_bounds = array<i64: 8, 32>}, {pipeline_mode = #tpu.pipeline_mode<synchronous>, transform_indices = @transform_1, window_bounds = array<i64: 32, 32>}, {pipeline_mode = #tpu.pipeline_mode<synchronous>, transform_indices = @transform_2, window_bounds = array<i64: 1, 32>}, {pipeline_mode = #tpu.pipeline_mode<synchronous>, transform_indices = @transform_3, window_bounds = array<i64: 2, 32>}, {transform_indices = @transform_4, window_bounds = array<i64: 2>}, {transform_indices = @transform_5, window_bounds = array<i64: 8, 2>}]} {
    %c0 = arith.constant 0 : index
    %c0_0 = arith.constant 0 : index
    %0 = vector.load %arg1[%c0, %c0_0] : memref<8x32xf32, #tpu.memory_space<vmem>>, vector<8x32xf32>
    %1 = arith.truncf %0 : vector<8x32xf32> to vector<8x32xbf16>
    %c0_1 = arith.constant 0 : index
    %c0_2 = arith.constant 0 : index
    %2 = vector.load %arg2[%c0_1, %c0_2] : memref<32x32xbf16, #tpu.memory_space<vmem>>, vector<32x32xbf16>
    %cst = arith.constant dense<0.000000e+00> : vector<8x32xf32>
    %3 = tpu.matmul %1, %2, %cst {dimension_numbers = #tpu.dot_dimension_numbers<[1], [0], [0], [1], [0, 0, 1, 1], [], []>} : vector<8x32xbf16>, vector<32x32xbf16>, vector<8x32xf32> -> vector<8x32xf32>
    %c0_3 = arith.constant 0 : index
    %c0_4 = arith.constant 0 : index
    %4 = vector.load %arg3[%c0_3, %c0_4] : memref<1x32xf32, #tpu.memory_space<vmem>>, vector<1x32xf32>
    %5 = vector.broadcast %4 : vector<1x32xf32> to vector<8x32xf32>
    %6 = arith.addf %3, %5 : vector<8x32xf32>
    %cst_5 = arith.constant 0.000000e+00 : f32
    %7 = vector.broadcast %cst_5 : f32 to vector<8x32xf32>
    %8 = arith.maximumf %6, %7 : vector<8x32xf32>
    %c0_6 = arith.constant 0 : index
    %c0_7 = arith.constant 0 : index
    %9 = vector.load %arg4[%c0_6, %c0_7] : memref<2x32xf32, #tpu.memory_space<vmem>>, vector<2x32xf32>
    %10 = vector.extract_strided_slice %9 {offsets = [0, 0], sizes = [1, 32], strides = [1, 1]} : vector<2x32xf32> to vector<1x32xf32>
    %11 = vector.broadcast %10 : vector<1x32xf32> to vector<8x32xf32>
    %12 = arith.mulf %8, %11 : vector<8x32xf32>
    %cst_8 = arith.constant dense<0.000000e+00> : vector<8xf32>
    %13 = vector.multi_reduction <add>, %12, %cst_8 [1] : vector<8x32xf32> to vector<8xf32>
    %14 = vector.shape_cast %13 : vector<8xf32> to vector<8x1xf32>
    %c0_9 = arith.constant 0 : index
    %15 = memref.load %arg5[%c0_9] : memref<2xf32, #tpu.memory_space<smem>>
    %16 = vector.broadcast %15 : f32 to vector<8x1xf32>
    %17 = arith.addf %14, %16 : vector<8x1xf32>
    %cst_10 = arith.constant 0.000000e+00 : f32
    %18 = vector.broadcast %cst_10 : f32 to vector<8x1xf32>
    %19 = arith.maximumf %17, %18 : vector<8x1xf32>
    %20 = math.absf %17 : vector<8x1xf32>
    %cst_11 = arith.constant 0.000000e+00 : f32
    %21 = vector.broadcast %cst_11 : f32 to vector<8x1xf32>
    %22 = arith.subf %21, %20 : vector<8x1xf32>
    %23 = math.exp %22 : vector<8x1xf32>
    %cst_12 = arith.constant 1.000000e+00 : f32
    %24 = vector.broadcast %cst_12 : f32 to vector<8x1xf32>
    %25 = arith.addf %24, %23 : vector<8x1xf32>
    %cst_13 = arith.constant 1.000000e+00 : f32
    %26 = vector.broadcast %cst_13 : f32 to vector<8x1xf32>
    %27 = arith.subf %25, %26 : vector<8x1xf32>
    %cst_14 = arith.constant 0.000000e+00 : f32
    %28 = vector.broadcast %cst_14 : f32 to vector<8x1xf32>
    %29 = arith.cmpf oeq, %27, %28 : vector<8x1xf32>
    %30 = math.log %25 : vector<8x1xf32>
    %31 = arith.divf %23, %27 : vector<8x1xf32>
    %32 = arith.mulf %30, %31 : vector<8x1xf32>
    %33 = arith.select %29, %23, %32 : vector<8x1xi1>, vector<8x1xf32>
    %34 = arith.addf %19, %33 : vector<8x1xf32>
    %cst_15 = arith.constant 2.000000e+01 : f32
    %35 = vector.broadcast %cst_15 : f32 to vector<8x1xf32>
    %36 = arith.cmpf ogt, %17, %35 : vector<8x1xf32>
    %37 = arith.select %36, %17, %34 : vector<8x1xi1>, vector<8x1xf32>
    %c0_16 = arith.constant 0 : index
    %c0_17 = arith.constant 0 : index
    %38 = vector.load %arg6[%c0_16, %c0_17] : memref<8x2xf32, #tpu.memory_space<vmem>>, vector<8x1xf32>
    tpu.vector_store %arg6[%c0_16, %c0_17], %37 {strides = array<i32>} : memref<8x2xf32, #tpu.memory_space<vmem>>, vector<8x1xf32>,
    %39 = vector.extract_strided_slice %9 {offsets = [1, 0], sizes = [1, 32], strides = [1, 1]} : vector<2x32xf32> to vector<1x32xf32>
    %40 = vector.broadcast %39 : vector<1x32xf32> to vector<8x32xf32>
    %41 = arith.mulf %8, %40 : vector<8x32xf32>
    %cst_18 = arith.constant dense<0.000000e+00> : vector<8xf32>
    %42 = vector.multi_reduction <add>, %41, %cst_18 [1] : vector<8x32xf32> to vector<8xf32>
    %43 = vector.shape_cast %42 : vector<8xf32> to vector<8x1xf32>
    %c1 = arith.constant 1 : index
    %44 = memref.load %arg5[%c1] : memref<2xf32, #tpu.memory_space<smem>>
    %45 = vector.broadcast %44 : f32 to vector<8x1xf32>
    %46 = arith.addf %43, %45 : vector<8x1xf32>
    %cst_19 = arith.constant 0.000000e+00 : f32
    %47 = vector.broadcast %cst_19 : f32 to vector<8x1xf32>
    %48 = arith.maximumf %46, %47 : vector<8x1xf32>
    %49 = math.absf %46 : vector<8x1xf32>
    %cst_20 = arith.constant 0.000000e+00 : f32
    %50 = vector.broadcast %cst_20 : f32 to vector<8x1xf32>
    %51 = arith.subf %50, %49 : vector<8x1xf32>
    %52 = math.exp %51 : vector<8x1xf32>
    %cst_21 = arith.constant 1.000000e+00 : f32
    %53 = vector.broadcast %cst_21 : f32 to vector<8x1xf32>
    %54 = arith.addf %53, %52 : vector<8x1xf32>
    %cst_22 = arith.constant 1.000000e+00 : f32
    %55 = vector.broadcast %cst_22 : f32 to vector<8x1xf32>
    %56 = arith.subf %54, %55 : vector<8x1xf32>
    %cst_23 = arith.constant 0.000000e+00 : f32
    %57 = vector.broadcast %cst_23 : f32 to vector<8x1xf32>
    %58 = arith.cmpf oeq, %56, %57 : vector<8x1xf32>
    %59 = math.log %54 : vector<8x1xf32>
    %60 = arith.divf %52, %56 : vector<8x1xf32>
    %61 = arith.mulf %59, %60 : vector<8x1xf32>
    %62 = arith.select %58, %52, %61 : vector<8x1xi1>, vector<8x1xf32>
    %63 = arith.addf %48, %62 : vector<8x1xf32>
    %cst_24 = arith.constant 2.000000e+01 : f32
    %64 = vector.broadcast %cst_24 : f32 to vector<8x1xf32>
    %65 = arith.cmpf ogt, %46, %64 : vector<8x1xf32>
    %66 = arith.select %65, %46, %63 : vector<8x1xi1>, vector<8x1xf32>
    %c0_25 = arith.constant 0 : index
    %c1_26 = arith.constant 1 : index
    %67 = vector.load %arg6[%c0_25, %c1_26] : memref<8x2xf32, #tpu.memory_space<vmem>>, vector<8x1xf32>
    tpu.vector_store %arg6[%c0_25, %c1_26], %66 {strides = array<i32>} : memref<8x2xf32, #tpu.memory_space<vmem>>, vector<8x1xf32>,
    return
  }
  func.func @transform_0(%arg0: i32) -> (i32, i32) {
    %c0_i32 = arith.constant 0 : i32
    %c0_i32_0 = arith.constant 0 : i32
    return %arg0, %c0_i32 : i32, i32
  }
  func.func @transform_1(%arg0: i32) -> (i32, i32) {
    %c0_i32 = arith.constant 0 : i32
    %c0_i32_0 = arith.constant 0 : i32
    %c0_i32_1 = arith.constant 0 : i32
    return %c0_i32, %c0_i32_0 : i32, i32
  }
  func.func @transform_2(%arg0: i32) -> (i32, i32) {
    %c0_i32 = arith.constant 0 : i32
    %c0_i32_0 = arith.constant 0 : i32
    %c0_i32_1 = arith.constant 0 : i32
    return %c0_i32, %c0_i32_0 : i32, i32
  }
  func.func @transform_3(%arg0: i32) -> (i32, i32) {
    %c0_i32 = arith.constant 0 : i32
    %c0_i32_0 = arith.constant 0 : i32
    %c0_i32_1 = arith.constant 0 : i32
    return %c0_i32, %c0_i32_0 : i32, i32
  }
  func.func @transform_4(%arg0: i32) -> i32 {
    %c0_i32 = arith.constant 0 : i32
    %c0_i32_0 = arith.constant 0 : i32
    return %c0_i32 : i32
  }
  func.func @transform_5(%arg0: i32) -> (i32, i32) {
    %c0_i32 = arith.constant 0 : i32
    %c0_i32_0 = arith.constant 0 : i32
    return %arg0, %c0_i32 : i32, i32
  }
}

</mosaic_0001>

<bundles_post_ra>
// kernel: tpu_custom_call.1
= control target key start
LH: loop header
LB: loop body
LE: loop exit
PB: predicated region body
PF: predicated region fallthrough
CT: control target
= control target key end

     0   :  { %10 = vsyncpa [#allocation3], 0  ;;  %s385_s0 = inlined_call_operand.hbm [shape: f32[8,32], index: 0, kind: input, shape index: {}]   ;;  %s386_s1 = inlined_call_operand.hbm [shape: bf16[32,32], index: 1, kind: input, shape index: {}]   ;;  %s387_s2 = inlined_call_operand.vmem [shape: f32[1,32], index: 2, kind: input, shape index: {}]   ;;  %s388_s3 = inlined_call_operand.vmem [shape: f32[2,32], index: 3, kind: input, shape index: {}]   ;;  %s389_s4 = inlined_call_operand.vmem [shape: f32[2], index: 4, kind: input, shape index: {}]   ;;  %s390_s5 = inlined_call_operand.vmem [shape: f32[8,2], index: 5, kind: output, shape index: {}]  }
   0x1   :  { %11 = vsyncpa [#allocation6], 0 }
   0x2   :  { %12 = vsyncpa [#allocation4], 0  ;;  %s299_s18 = smov [#allocation2]   ;;  %s300_s20 = smov [#allocation5]  }
   0x3   :  { %s19_s19 = sshll.u32 %s299_s18, 4  ;;  %s28_s21 = sshll.u32 %s300_s20, 4  ;;  %s20_s19 = int_to_ptr.vmem [resolvable:$true] %s19_s19  ;;  %s336_s21 = int_to_ptr.vmem [resolvable:$true] %s28_s21 }
   0x4   :  { %s237_s24 = scalar_lea.hbm %s385_s0, 128 }
   0x5   :  { %p238_p0 = scmp.ne.s32.totalorder %s385_s0, %s237_s24  ;;  %p241_p1 = scmp.lt.u32.totalorder %s237_s24, %s385_s0 }
   0x7   :  { %p243_p2 = pnand %p241_p1, %p238_p0 }
   0x9   :  { %246 = shalt.err (!%p243_p2)
}
   0xa   :  { %s247_s29 = scalar_lea.vmem %s20_s19, 128  ;;  %p252_p4 = scmp.lt.s32.totalorder %s20_s19, %s20_s19 }
   0xb   :  { %p248_p3 = scmp.ne.s32.totalorder %s20_s19, %s247_s29  ;;  %p253_p5 = scmp.lt.s32.totalorder %s247_s29, %s247_s29 }
   0xd   :  { %p254_p6 = por %p253_p5, %p252_p4 }
   0xf   :  { %p255_p7 = pnand %p254_p6, %p248_p3 }
  0x11   :  { %258 = shalt.err (!%p255_p7)
}
  0x12   :  { %22 = dma.hbm_to_vmem [thread:$0]  %s385_s0, 128, %s20_s19, [#allocation3]  }
  0x13   :  { %s259_s9 = scalar_lea.hbm %s386_s1, 256 }
  0x14   :  { %p260_p8 = scmp.ne.s32.totalorder %s386_s1, %s259_s9  ;;  %p263_p9 = scmp.lt.u32.totalorder %s259_s9, %s386_s1 }
  0x16   :  { %p265_p10 = pnand %p263_p9, %p260_p8 }
  0x18   :  { %268 = shalt.err (!%p265_p10)
}
  0x19   :  { %s269_s14 = scalar_lea.vmem %s336_s21, 256  ;;  %p274_p12 = scmp.lt.s32.totalorder %s336_s21, %s336_s21 }
  0x1a   :  { %p270_p11 = scmp.ne.s32.totalorder %s336_s21, %s269_s14  ;;  %p275_p13 = scmp.lt.s32.totalorder %s269_s14, %s269_s14 }
  0x1c   :  { %p276_p0 = por %p275_p13, %p274_p12 }
  0x1e   :  { %p277_p1 = pnand %p276_p0, %p270_p11 }
  0x20   :  { %280 = shalt.err (!%p277_p1)
}
  0x21   :  { %s301_s0 = smov 64   ;;  %s302_s15 = smov 4  }
  0x22   :  { %34 = dma.hbm_to_vmem [thread:$0]  %s386_s1, 256, %s336_s21, [#allocation6], %s301_s0, %s301_s0, %s302_s15  }
  0x23   :  { %s45_s20 = sshll.u32 %s389_s4, 4  ;;  %s46_s20 = int_to_ptr.vmem [resolvable:$true] %s45_s20 }
  0x24   :  { %s281_s22 = scalar_lea.vmem %s46_s20, 16  ;;  %p286_p3 = scmp.lt.s32.totalorder %s46_s20, %s46_s20 }
  0x25   :  { %p282_p2 = scmp.ne.s32.totalorder %s46_s20, %s281_s22  ;;  %p287_p4 = scmp.lt.s32.totalorder %s281_s22, %s281_s22 }
  0x27   :  { %p288_p5 = por %p287_p4, %p286_p3 }
  0x29   :  { %p289_p6 = pnand %p288_p5, %p282_p2 }
  0x2b   :  { %292 = shalt.err (!%p289_p6)
}
  0x2c   :  { %s303_s23 = smov [#allocation7]  }
  0x2d   :  { %48 = dma.vmem_to_smem %s46_s20, 16, %s303_s23, [#allocation4]  }
  0x2e   :  { %293 = dma.done.wait [#allocation3], 128  }
  0x2f   :  { %294 = vsyncadd [#allocation3], 4294967168 }
  0x30   :  { %295 = dma.done.wait [#allocation6], 256  }
  0x31   :  { %296 = vsyncadd [#allocation6], 4294967040 }
  0x32   :  { %297 = dma.done.wait [#allocation4], 16  }
  0x33   :  { %298 = vsyncadd [#allocation4], 4294967280 }
  0x34   :  { %58 = sfence }
  0x35   :  { %v223_v0 = vld [vmem:[#allocation5] sm:$0xff]   ;;  %v304_v1 = vmov 0.0   ;;  %v224_v2 = vld [vmem:[#allocation5 + $0x8] sm:$0xff]   ;;  %vm305_vm0 = vmmov 0   ;;  %v60_v3 = vld [vmem:[#allocation2] sm:$0xff]  ;;  %vm85_vm1 = vcmask 261120   ;;  %v131_v5 = vlaneseq }
  0x36   :  { %208 = vmatprep.subr.bf16.mxu0 %v304_v1  ;;  %212 = vmatprep.mubr.msk.bf16.mxu0 %vm305_vm0, %v304_v1  ;;  %v61_v4 = vpack.c.bf16 %v60_v3, %v60_v3  ;;  %v198_v8 = vld [vmem:[%s387_s2] ss:$0 sm:$0xff]  ;;  %s139_s2 = sld [smem:[#allocation7]]  ;;  %s203_s25 = sld [smem:[#allocation7 + $0x1]]  ;;  %vm159_vm3 = vcmask 7168   ;;  %vm189_vm6 = vcmask 15368  }
  0x37   :  { %209 = vmatpush3.bf16.msra.mxu0 %v223_v0  ;;  %v132_v6 = vshrl.u32 %v131_v5, 7  ;;  %v130_v9 = vld [vmem:[%s388_s3] sm:$0x3] }
  0x38   :  { %210 = vmatprep.subr.bf16.mxu0 %v304_v1 }
  0x39   :  { %v133_v7 = vsub.s32 0, %v132_v6  ;;  %v163_v10 = vsub.s32 1, %v132_v6 }
  0x3b   :  { %211 = vmatpush3.bf16.msra.mxu0 %v224_v2  ;;  %v134_v14 = vrot.slane %v130_v9, %v133_v7  ;;  %v164_v18 = vrot.slane %v130_v9, %v163_v10 }
  0x3c   :  { %v140_v23 = vstv %s139_s2  ;;  %v170_v26 = vstv %s203_s25 }
  0x3e   :  { %213 = vmatmul.mubr.msk.bf16.vlgmr.msra.gmra.mrb[0].mxu0 %vm85_vm1, %v61_v4 }
 0x111   :  { %v123_v11 = vpop.f32.mrb[0].mxu0 }
 0x112   :  { %v124_v12 = vadd.f32 %v198_v8, %v123_v11  ;;  %v214_v13 = vpop.f32.mrb[1].mxu0 }
 0x113   :  { %v126_v15 = vpop.f32.mrb[2].mxu0 }
 0x114   :  { %v129_v16 = vmax.f32 %v124_v12, 0.0  ;;  %v215_v17 = vpop.f32.mrb[3].mxu0 }
 0x116   :  { %v135_v19 = vmul.f32 %v134_v14, %v129_v16  ;;  %v165_v21 = vmul.f32 %v164_v18, %v129_v16 }
 0x118   :  { %v136_v20 = vsel %vm85_vm1, %v135_v19, 0.0  ;;  %v166_v22 = vsel %vm85_vm1, %v165_v21, 0.0 }
 0x119   :  { %137 = vadd.xlane.f32.xlu0 %v136_v20 }
 0x11d   :  { %167 = vadd.xlane.f32.xlu0 %v166_v22 }
 0x1a6   :  { %v138_v24 = vpop.xlane.xlu0 %137 }
 0x1a7   :  { %v141_v25 = vadd.f32 %v140_v23, %v138_v24 }
 0x1a9   :  { %v143_v27 = vand.u32 2147483647, %v141_v25  ;;  %v142_v48 = vmax.f32 %v141_v25, 0.0  ;;  %vm157_vm4 = vcmp.gt.f32.partialorder %v141_v25, 20.0 }
 0x1aa   :  { %v168_v28 = vpop.xlane.xlu0 %167 }
 0x1ab   :  { %v144_v29 = vsub.f32 0.0, %v143_v27  ;;  %v171_v30 = vadd.f32 %v170_v26, %v168_v28 }
 0x1ad   :  { %v145_v31 = vmul.f32 1.442695, %v144_v29  ;;  %v173_v32 = vand.u32 2147483647, %v171_v30  ;;  %v172_v55 = vmax.f32 %v171_v30, 0.0  ;;  %vm187_vm7 = vcmp.gt.f32.partialorder %v171_v30, 20.0 }
 0x1af   :  { %225 = vpow2.f32 %v145_v31  ;;  %v174_v33 = vsub.f32 0.0, %v173_v32 }
 0x1b1   :  { %v175_v34 = vmul.f32 1.442695, %v174_v33 }
 0x1b3   :  { %227 = vpow2.f32 %v175_v34 }
 0x1b9   :  { %v226_v35 = vpop.eup %225 }
 0x1ba   :  { %v147_v36 = vadd.f32 1.0, %v226_v35 }
 0x1bc   :  { %v202_v37 = vadd.f32 -1.0, %v147_v36  ;;  %229 = vlog2.f32 %v147_v36 }
 0x1bd   :  { %v228_v38 = vpop.eup %227 }
 0x1be   :  { %231 = vrcp.f32 %v202_v37  ;;  %v177_v39 = vadd.f32 1.0, %v228_v38  ;;  %vm149_vm2 = vcmp.eq.f32.partialorder %v202_v37, 0.0 }
 0x1c0   :  { %v204_v40 = vadd.f32 -1.0, %v177_v39  ;;  %233 = vlog2.f32 %v177_v39 }
 0x1c2   :  { %235 = vrcp.f32 %v204_v40  ;;  %vm179_vm5 = vcmp.eq.f32.partialorder %v204_v40, 0.0 }
 0x1c6   :  { %v230_v41 = vpop.eup %229 }
 0x1c7   :  { %v151_v43 = vmul.f32 0.6931472, %v230_v41 }
 0x1c8   :  { %v232_v42 = vpop.eup %231 }
 0x1c9   :  { %v153_v44 = vmul.f32 %v232_v42, %v226_v35 }
 0x1ca   :  { %v234_v45 = vpop.eup %233 }
 0x1cb   :  { %v154_v46 = vmul.f32 %v153_v44, %v151_v43  ;;  %v181_v50 = vmul.f32 0.6931472, %v234_v45 }
 0x1cc   :  { %v236_v47 = vpop.eup %235 }
 0x1cd   :  { %v155_v49 = vsel %vm149_vm2, %v226_v35, %v154_v46  ;;  %v183_v51 = vmul.f32 %v236_v47, %v228_v38 }
 0x1ce   :  { %v156_v52 = vadd.f32 %v155_v49, %v142_v48 }
 0x1cf   :  { %v184_v53 = vmul.f32 %v183_v51, %v181_v50 }
 0x1d0   :  { %v158_v54 = vsel %vm157_vm4, %v141_v25, %v156_v52 }
 0x1d1   :  { %160 = vst.msk [vmem:[%s390_s5] sm:$0xff] %vm159_vm3, %v158_v54  ;;  %v185_v56 = vsel %vm179_vm5, %v228_v38, %v184_v53 }
 0x1d2   :  { %v186_v57 = vadd.f32 %v185_v56, %v172_v55 }
 0x1d4   :  { %v188_v58 = vsel %vm187_vm7, %v171_v30, %v186_v57 }
 0x1d5   :  { %190 = vst.msk [vmem:[%s390_s5] sm:$0xff] %vm189_vm6, %v188_v58 }
 0x1d6   :  { %195 = vsyncpa [#allocation3], 1 }
 0x1d7   :  { %196 = vsyncpa [#allocation6], 1 }
 0x1d8   :  { %197 = vsyncpa [#allocation4], 1 }

</bundles_post_ra>
